<compile_context>
chip_gen: v7x
topology: tpu7x:2x2x1
jax: 0.10.0
libtpu: 0.0.40
codegen_flags: <defaults>
</compile_context>

<pallas_src>
import functools

import jax
import jax.numpy as jnp
from jax.experimental import pallas as pl
from jax.experimental.pallas import tpu as pltpu


def _round_up(x, m):
    return ((x + m - 1) // m) * m


def _vmem_capacity_bytes():
    """Per-core VMEM capacity; conservative 64 MiB (v7x) fallback if the query is unavailable."""
    try:
        cap = getattr(pltpu.get_tpu_info(), "vmem_capacity_bytes", None)
        if cap:
            return int(cap)
    except Exception:
        pass
    return 64 * 1024 * 1024


def _gclcp_kernel(adj_hbm, ego0_ref, out_ref, *scratch,
                  n_layers, n_tiles, tm, n_cached):
    """One invocation == full n_layers propagation + mean.

    adj_hbm : (n_tiles, tm, Np) bf16, HBM (pl.ANY) -- row panels of the normalized adjacency
    ego0_ref: (Np, Dp) bf16, VMEM                  -- concat(user_emb, item_emb), zero-padded
    out_ref : (Np, Dp) f32,  VMEM                  -- mean of propagated embeddings (layers k>0)
    scratch : [adj_cache (n_cached,tm,Np) bf16]?   -- panels pinned in VMEM across ALL layers
              [adj_stream (2,tm,Np) bf16]?         -- double buffer for re-streamed panels
              ego_a, ego_b (Np,Dp) bf16            -- ping/pong carry of propagated embeddings
              sem (3,) DMA semaphores              -- [0],[1]: stream slots, [2]: cache fill
    """
    n_streamed = n_tiles - n_cached
    inv = 1.0 / float(n_layers - 1)

    si = 0
    adj_cache = None
    adj_stream = None
    if n_cached > 0:
        adj_cache = scratch[si]
        si += 1
    if n_streamed > 0:
        adj_stream = scratch[si]
        si += 1
    ego_a, ego_b, sem = scratch[si], scratch[si + 1], scratch[si + 2]

    def stream_start(tile_idx, slot):
        pltpu.make_async_copy(adj_hbm.at[tile_idx], adj_stream.at[slot], sem.at[slot]).start()

    def stream_wait(slot):
        # dummy src of matching shape; only the semaphore / byte count matter for the wait
        pltpu.make_async_copy(adj_hbm.at[0], adj_stream.at[slot], sem.at[slot]).wait()

    # --- one-time fill of the persistent panel cache + prime the stream pipeline --------------
    if n_cached > 0:
        cache_cp = pltpu.make_async_copy(adj_hbm.at[pl.ds(0, n_cached)], adj_cache, sem.at[2])
        cache_cp.start()
    if n_streamed > 0:
        stream_start(n_cached, 0)                    # global streamed panel 0 -> slot 0
    if n_cached > 0:
        cache_cp.wait()

    # --- layer loop (static; n_layers is small) ------------------------------------------------
    for k in range(n_layers):
        src_ref = ego0_ref if k == 0 else (ego_a if (k - 1) % 2 == 0 else ego_b)
        dst_ref = ego_a if k % 2 == 0 else ego_b
        last_layer = (k == n_layers - 1)

        def emit_panel(t, a_panel):
            # rows [t*tm, (t+1)*tm) of this layer: (tm,Np)@(Np,Dp) on the MXU, f32 accumulation
            new_tile = jnp.dot(a_panel, src_ref[...], preferred_element_type=jnp.float32)
            r0 = t * tm
            if not isinstance(r0, int):
                r0 = pl.multiple_of(r0, tm)
            rows = pl.ds(r0, tm)
            if not last_layer:                       # last layer's carry is never read -> skip
                dst_ref[rows, :] = new_tile.astype(jnp.bfloat16)
            if k > 0:                                # reference accumulates layers k > 0 only
                acc = new_tile if k == 1 else out_ref[rows, :] + new_tile
                if last_layer:
                    acc = acc * inv                  # fold the mean into the final accumulation
                out_ref[rows, :] = acc

        # (a) panels pinned in VMEM: zero HBM traffic after the one-time fill.
        if n_cached > 0:
            if n_cached <= 8:                        # small: static unroll
                for t in range(n_cached):
                    emit_panel(t, adj_cache[t])
            else:                                    # large: rolled loop, bounded live ranges

                @pl.loop(0, n_cached)
                def _cached(t):
                    emit_panel(t, adj_cache[t])

        # (b) re-streamed panels: double-buffered DMA with cross-layer prefetch.
        if n_streamed > 0:

            @pl.loop(0, n_streamed)
            def _streamed(s):
                g = k * n_streamed + s               # global streamed-panel index
                slot = g % 2
                # Issue the next copy BEFORE waiting on this one: keeps two DMAs in flight and
                # hides the layer-boundary panel DMA (wraps to the next layer's first panel).
                if not last_layer:
                    stream_start(n_cached + (s + 1) % n_streamed, 1 - slot)
                else:
                    @pl.when(s + 1 < n_streamed)
                    def _prefetch():
                        stream_start(n_cached + s + 1, 1 - slot)
                stream_wait(slot)
                emit_panel(n_cached + s, adj_stream[slot])


def gclcp_forward(adj, ego, n_layers, *, tm=256, max_cached_panels=None):
    """mean_{k=1..n_layers-1} A^(k+1) @ ego0  ==  GCLCP_Encoder.forward (dense adjacency)."""
    assert n_layers >= 2, "reference torch.stack needs at least one appended layer"
    N, D = ego.shape
    assert adj.shape == (N, N)

    # Lane-dense padded layout: rows to a multiple of the panel height, D to a multiple of 128.
    Np = _round_up(N, tm)
    Dp = _round_up(max(D, 128), 128)
    n_tiles = Np // tm

    adj_p = jnp.zeros((Np, Np), jnp.bfloat16).at[:N, :N].set(adj.astype(jnp.bfloat16))
    ego_p = jnp.zeros((Np, Dp), jnp.bfloat16).at[:N, :D].set(ego.astype(jnp.bfloat16))
    adj_panels = adj_p.reshape(n_tiles, tm, Np)

    # Generation-aware VMEM budgeting: pin as many adjacency panels as fit across ALL layers.
    cap = _vmem_capacity_bytes()                     # 128 MiB v5e/v6e, 64 MiB v7x
    panel_bytes = tm * Np * 2
    ego_bytes = Np * Dp * (2 + 2 + 2 + 4)            # ego0 + 2 bf16 carries + f32 out
    usable = cap * 3 // 4                            # ~96 MiB v5e/v6e, ~48 MiB v7x
    cache_budget = max(0, usable - ego_bytes - 2 * panel_bytes)
    n_cached = min(n_tiles, cache_budget // panel_bytes)
    if max_cached_panels is not None:
        n_cached = min(n_cached, max_cached_panels)
    n_cached = int(n_cached)
    n_streamed = n_tiles - n_cached

    scratch = []
    if n_cached > 0:
        scratch.append(pltpu.VMEM((n_cached, tm, Np), jnp.bfloat16))   # persistent panel cache
    if n_streamed > 0:
        scratch.append(pltpu.VMEM((2, tm, Np), jnp.bfloat16))          # stream double buffer
    scratch += [pltpu.VMEM((Np, Dp), jnp.bfloat16),                    # ego ping
                pltpu.VMEM((Np, Dp), jnp.bfloat16),                    # ego pong
                pltpu.SemaphoreType.DMA((3,))]

    vmem_needed = (n_cached * panel_bytes + (2 * panel_bytes if n_streamed > 0 else 0)
                   + ego_bytes)
    vmem_limit = int(max(32 * 1024 * 1024,
                         min(cap * 95 // 100, vmem_needed + 8 * 1024 * 1024)))

    kernel = functools.partial(_gclcp_kernel, n_layers=n_layers, n_tiles=n_tiles,
                               tm=tm, n_cached=n_cached)

    cost = pl.CostEstimate(
        flops=2 * n_layers * Np * Np * Dp,
        transcendentals=0,
        bytes_accessed=(n_cached + n_layers * n_streamed) * panel_bytes + Np * Dp * (2 + 4))

    out = pl.pallas_call(
        kernel,
        out_shape=jax.ShapeDtypeStruct((Np, Dp), jnp.float32),
        in_specs=[
            pl.BlockSpec(memory_space=pl.ANY),                   # adjacency panels stay in HBM
            pl.BlockSpec(memory_space=pltpu.MemorySpace.VMEM),   # ego0 resident in VMEM
        ],
        out_specs=pl.BlockSpec(memory_space=pltpu.MemorySpace.VMEM),
        scratch_shapes=scratch,
        compiler_params=pltpu.CompilerParams(vmem_limit_bytes=vmem_limit),
        cost_estimate=cost,
    )(adj_panels, ego_p)

    return out[:N, :D]


# ----------------------- parameter / graph construction (plain JAX glue) ----------------------

def xavier_uniform(key, shape):
    fan_in, fan_out = shape
    bound = (6.0 / (fan_in + fan_out)) ** 0.5
    return jax.random.uniform(key, shape, jnp.float32, -bound, bound)


def build_norm_adj(key, user_num, item_num):
    """Dense symmetric-normalized Laplacian D^-1/2 [[0,R],[R^T,0]] D^-1/2."""
    R = (jax.random.uniform(key, (user_num, item_num)) < 0.15).astype(jnp.float32)
    N = user_num + item_num
    A = jnp.zeros((N, N), jnp.float32)
    A = A.at[:user_num, user_num:].set(R)
    A = A.at[user_num:, :user_num].set(R.T)
    deg = A.sum(axis=1)
    d_inv_sqrt = jnp.where(deg > 0, 1.0 / jnp.sqrt(deg), 0.0)
    return A * d_inv_sqrt[:, None] * d_inv_sqrt[None, :]


def reference_bf16(adj, ego, n_layers):
    """Matches the kernel's numerics: bf16 operands, f32 accumulation, bf16 carry."""
    a = adj.astype(jnp.bfloat16)
    e = ego.astype(jnp.bfloat16)
    acc = None
    for k in range(n_layers):
        new = jnp.dot(a, e, preferred_element_type=jnp.float32)
        e = new.astype(jnp.bfloat16)
        if k > 0:
            acc = new if acc is None else acc + new
    return acc / (n_layers - 1)


def reference_f32(adj, ego, n_layers):
    """Full-f32 semantic reference of the PyTorch forward."""
    e = ego
    layers = []
    for k in range(n_layers):
        e = adj @ e
        if k > 0:
            layers.append(e)
    return jnp.mean(jnp.stack(layers, axis=1), axis=1)


if __name__ == "__main__":
    emb_size, n_layers = 64, 3
    key = jax.random.PRNGKey(0)
    k0, k1 = jax.random.split(key)

    def make_case(k, user_num, item_num):
        k_adj, k_u, k_i = jax.random.split(k, 3)
        adj = build_norm_adj(k_adj, user_num, item_num)
        ego = jnp.concatenate([xavier_uniform(k_u, (user_num, emb_size)),
                               xavier_uniform(k_i, (item_num, emb_size))], axis=0)
        return adj, ego

    # Case 1: small graph (N = 256) -> adjacency fully VMEM-resident (single cached panel).
    user_num, item_num = 96, 160
    adj, ego = make_case(k0, user_num, item_num)
    out = jax.block_until_ready(gclcp_forward(adj, ego, n_layers))
    user_all_embeddings = out[:user_num]
    item_all_embeddings = out[user_num:]
    assert user_all_embeddings.shape == (user_num, emb_size)
    assert item_all_embeddings.shape == (item_num, emb_size)
    assert jnp.allclose(out, reference_bf16(adj, ego, n_layers), atol=1e-3, rtol=1e-2), \
        "kernel/bf16-reference mismatch (resident path)"
    assert jnp.allclose(out, reference_f32(adj, ego, n_layers), atol=5e-3, rtol=5e-2), \
        "kernel/f32-reference mismatch (resident path)"

    # Cases 2/3: larger graph (N = 512, two row panels).  Force the fully-streamed and the
    # hybrid (pinned-cache + stream) paths that big graphs would take automatically.
    adj2, ego2 = make_case(k1, 200, 312)
    ref2 = reference_bf16(adj2, ego2, n_layers)
    for cached in (0, 1):
        out2 = jax.block_until_ready(
            gclcp_forward(adj2, ego2, n_layers, max_cached_panels=cached))
        assert jnp.allclose(out2, ref2, atol=1e-3, rtol=1e-2), \
            f"kernel/bf16-reference mismatch (cached={cached})"

    print("KERNEL_OK")
</pallas_src>

<mosaic_0001>
module attributes {stable_mosaic.version = 11 : i64} {
  func.func @_gclcp_kernel(%arg0: memref<1x256x256xbf16, #tpu.memory_space<any>>, %arg1: memref<256x128xbf16, #tpu.memory_space<vmem>>, %arg2: memref<256x128xf32, #tpu.memory_space<vmem>>, %arg3: memref<1x256x256xbf16, #tpu.memory_space<vmem>>, %arg4: memref<256x128xbf16, #tpu.memory_space<vmem>>, %arg5: memref<256x128xbf16, #tpu.memory_space<vmem>>, %arg6: memref<3x!tpu.dma_semaphore, #tpu.memory_space<semaphore_mem>>) attributes {dimension_semantics = [], scalar_prefetch = 0 : i64, scratch_operands = 4 : i64, tpu.core_type = #tpu.core_type<tc>} {
    %c2_i32 = arith.constant 2 : i32
    %c0_i32 = arith.constant 0 : i32
    %c0_i32_0 = arith.constant 0 : i32
    %c0_i32_1 = arith.constant 0 : i32
    %0 = tpu.memref_slice %arg0[%c0_i32, %c0_i32_0, %c0_i32_1] : memref<1x256x256xbf16, #tpu.memory_space<any>> -> memref<1x256x256xbf16, #tpu.memory_space<any>>
    %1 = tpu.memref_slice %arg6[%c2_i32] : memref<3x!tpu.dma_semaphore, #tpu.memory_space<semaphore_mem>> -> memref<1x!tpu.dma_semaphore, #tpu.memory_space<semaphore_mem>>
    %2 = tpu.memref_squeeze %1 : memref<1x!tpu.dma_semaphore, #tpu.memory_space<semaphore_mem>> -> memref<!tpu.dma_semaphore, #tpu.memory_space<semaphore_mem>>
    tpu.enqueue_dma source(%0 : memref<1x256x256xbf16, #tpu.memory_space<any>>) target(%arg3 : memref<1x256x256xbf16, #tpu.memory_space<vmem>>) target_semaphore(%2 : memref<!tpu.dma_semaphore, #tpu.memory_space<semaphore_mem>>)
    %c2_i32_2 = arith.constant 2 : i32
    %c0_i32_3 = arith.constant 0 : i32
    %c0_i32_4 = arith.constant 0 : i32
    %c0_i32_5 = arith.constant 0 : i32
    %3 = tpu.memref_slice %arg0[%c0_i32_3, %c0_i32_4, %c0_i32_5] : memref<1x256x256xbf16, #tpu.memory_space<any>> -> memref<1x256x256xbf16, #tpu.memory_space<any>>
    %4 = tpu.memref_slice %arg6[%c2_i32_2] : memref<3x!tpu.dma_semaphore, #tpu.memory_space<semaphore_mem>> -> memref<1x!tpu.dma_semaphore, #tpu.memory_space<semaphore_mem>>
    %5 = tpu.memref_squeeze %4 : memref<1x!tpu.dma_semaphore, #tpu.memory_space<semaphore_mem>> -> memref<!tpu.dma_semaphore, #tpu.memory_space<semaphore_mem>>
    tpu.wait_dma2 semaphore(%5 : memref<!tpu.dma_semaphore, #tpu.memory_space<semaphore_mem>>) src(%3 : memref<1x256x256xbf16, #tpu.memory_space<any>>) dst(%arg3 : memref<1x256x256xbf16, #tpu.memory_space<vmem>>)
    %c0 = arith.constant 0 : index
    %c0_6 = arith.constant 0 : index
    %c0_7 = arith.constant 0 : index
    %6 = vector.load %arg3[%c0, %c0_6, %c0_7] : memref<1x256x256xbf16, #tpu.memory_space<vmem>>, vector<1x256x256xbf16>
    %7 = vector.shape_cast %6 : vector<1x256x256xbf16> to vector<256x256xbf16>
    %c0_8 = arith.constant 0 : index
    %c0_9 = arith.constant 0 : index
    %8 = vector.load %arg1[%c0_8, %c0_9] : memref<256x128xbf16, #tpu.memory_space<vmem>>, vector<256x128xbf16>
    %cst = arith.constant dense<0.000000e+00> : vector<256x128xf32>
    %9 = tpu.matmul %7, %8, %cst {dimension_numbers = #tpu.dot_dimension_numbers<[1], [0], [0], [1], [0, 0, 1, 1], [], []>} : vector<256x256xbf16>, vector<256x128xbf16>, vector<256x128xf32> -> vector<256x128xf32>
    %10 = arith.truncf %9 : vector<256x128xf32> to vector<256x128xbf16>
    %c0_10 = arith.constant 0 : index
    %c0_11 = arith.constant 0 : index
    %11 = vector.load %arg4[%c0_10, %c0_11] : memref<256x128xbf16, #tpu.memory_space<vmem>>, vector<256x128xbf16>
    tpu.vector_store %arg4[%c0_10, %c0_11], %10 {strides = array<i32>} : memref<256x128xbf16, #tpu.memory_space<vmem>>, vector<256x128xbf16>,
    %c0_12 = arith.constant 0 : index
    %c0_13 = arith.constant 0 : index
    %c0_14 = arith.constant 0 : index
    %12 = vector.load %arg3[%c0_12, %c0_13, %c0_14] : memref<1x256x256xbf16, #tpu.memory_space<vmem>>, vector<1x256x256xbf16>
    %13 = vector.shape_cast %12 : vector<1x256x256xbf16> to vector<256x256xbf16>
    %c0_15 = arith.constant 0 : index
    %c0_16 = arith.constant 0 : index
    %14 = vector.load %arg4[%c0_15, %c0_16] : memref<256x128xbf16, #tpu.memory_space<vmem>>, vector<256x128xbf16>
    %cst_17 = arith.constant dense<0.000000e+00> : vector<256x128xf32>
    %15 = tpu.matmul %13, %14, %cst_17 {dimension_numbers = #tpu.dot_dimension_numbers<[1], [0], [0], [1], [0, 0, 1, 1], [], []>} : vector<256x256xbf16>, vector<256x128xbf16>, vector<256x128xf32> -> vector<256x128xf32>
    %16 = arith.truncf %15 : vector<256x128xf32> to vector<256x128xbf16>
    %c0_18 = arith.constant 0 : index
    %c0_19 = arith.constant 0 : index
    %17 = vector.load %arg5[%c0_18, %c0_19] : memref<256x128xbf16, #tpu.memory_space<vmem>>, vector<256x128xbf16>
    tpu.vector_store %arg5[%c0_18, %c0_19], %16 {strides = array<i32>} : memref<256x128xbf16, #tpu.memory_space<vmem>>, vector<256x128xbf16>,
    %c0_20 = arith.constant 0 : index
    %c0_21 = arith.constant 0 : index
    %18 = vector.load %arg2[%c0_20, %c0_21] : memref<256x128xf32, #tpu.memory_space<vmem>>, vector<256x128xf32>
    tpu.vector_store %arg2[%c0_20, %c0_21], %15 {strides = array<i32>} : memref<256x128xf32, #tpu.memory_space<vmem>>, vector<256x128xf32>,
    %c0_22 = arith.constant 0 : index
    %c0_23 = arith.constant 0 : index
    %c0_24 = arith.constant 0 : index
    %19 = vector.load %arg3[%c0_22, %c0_23, %c0_24] : memref<1x256x256xbf16, #tpu.memory_space<vmem>>, vector<1x256x256xbf16>
    %20 = vector.shape_cast %19 : vector<1x256x256xbf16> to vector<256x256xbf16>
    %c0_25 = arith.constant 0 : index
    %c0_26 = arith.constant 0 : index
    %21 = vector.load %arg5[%c0_25, %c0_26] : memref<256x128xbf16, #tpu.memory_space<vmem>>, vector<256x128xbf16>
    %cst_27 = arith.constant dense<0.000000e+00> : vector<256x128xf32>
    %22 = tpu.matmul %20, %21, %cst_27 {dimension_numbers = #tpu.dot_dimension_numbers<[1], [0], [0], [1], [0, 0, 1, 1], [], []>} : vector<256x256xbf16>, vector<256x128xbf16>, vector<256x128xf32> -> vector<256x128xf32>
    %c0_28 = arith.constant 0 : index
    %c0_29 = arith.constant 0 : index
    %23 = vector.load %arg2[%c0_28, %c0_29] : memref<256x128xf32, #tpu.memory_space<vmem>>, vector<256x128xf32>
    %24 = arith.addf %23, %22 : vector<256x128xf32>
    %cst_30 = arith.constant 5.000000e-01 : f32
    %25 = vector.broadcast %cst_30 : f32 to vector<256x128xf32>
    %26 = arith.mulf %24, %25 : vector<256x128xf32>
    %c0_31 = arith.constant 0 : index
    %c0_32 = arith.constant 0 : index
    %27 = vector.load %arg2[%c0_31, %c0_32] : memref<256x128xf32, #tpu.memory_space<vmem>>, vector<256x128xf32>
    tpu.vector_store %arg2[%c0_31, %c0_32], %26 {strides = array<i32>} : memref<256x128xf32, #tpu.memory_space<vmem>>, vector<256x128xf32>,
    return
  }
}

</mosaic_0001>

<bundles_post_ra>
// kernel: tpu_custom_call.1
= control target key start
LH: loop header
LB: loop body
LE: loop exit
PB: predicated region body
PF: predicated region fallthrough
CT: control target
= control target key end

     0   :  { %7 = vsyncpa [#allocation7], 0  ;;  %s1861_s0 = inlined_call_operand.hbm [shape: bf16[1,256,256], index: 0, kind: input, shape index: {}]   ;;  %s1862_s1 = inlined_call_operand.hbm [shape: bf16[256,128], index: 1, kind: input, shape index: {}]   ;;  %s1863_s2 = inlined_call_operand.hbm [shape: f32[256,128], index: 2, kind: output, shape index: {}]  }
   0x1   :  { %8 = vsyncpa [#allocation8], 0  ;;  %s1516_s9 = smov [#allocation6]   ;;  %s1466_s13 = scalar_lea.hbm %s1862_s1, 2048 }
   0x2   :  { %s14_s10 = sshll.u32 %s1516_s9, 4  ;;  %p1467_p0 = scmp.ne.s32.totalorder %s1862_s1, %s1466_s13  ;;  %s15_s10 = int_to_ptr.vmem [resolvable:$true] %s14_s10 }
   0x3   :  { %p1470_p1 = scmp.lt.u32.totalorder %s1466_s13, %s1862_s1 }
   0x5   :  { %p1472_p2 = pnand %p1470_p1, %p1467_p0 }
   0x7   :  { %1475 = shalt.err (!%p1472_p2)
}
   0x8   :  { %s1476_s18 = scalar_lea.vmem %s15_s10, 2048  ;;  %p1481_p4 = scmp.lt.s32.totalorder %s15_s10, %s15_s10 }
   0x9   :  { %p1477_p3 = scmp.ne.s32.totalorder %s15_s10, %s1476_s18  ;;  %p1482_p5 = scmp.lt.s32.totalorder %s1476_s18, %s1476_s18 }
   0xb   :  { %p1483_p6 = por %p1482_p5, %p1481_p4 }
   0xd   :  { %p1484_p7 = pnand %p1483_p6, %p1477_p3 }
   0xf   :  { %1487 = shalt.err (!%p1484_p7)
}
  0x10   :  { %s1517_s19 = smov 64   ;;  %s1518_s20 = smov 4  }
  0x11   :  { %20 = dma.hbm_to_vmem [thread:$0]  %s1862_s1, 2048, %s15_s10, [#allocation7], %s1517_s19, %s1517_s19, %s1518_s20  }
  0x12   :  { %1510 = dma.done.wait [#allocation7], 2048  }
  0x13   :  { %1511 = vsyncadd [#allocation7], 4294965248  ;;  %s30_s23 = sld [smem:[#allocation0]]   ;;  %s1519_s24 = smov 256  }
  0x14   :  { %42 = sst [smem:[#allocation11]] %s1519_s24  ;;  %s1520_s25 = smov 2  }
  0x15   :  { %44 = sst [smem:[#allocation11 + $0x1]] %s1519_s24  ;;  %s1521_s26 = smov [#allocation2]  }
  0x16   :  { %46 = sst [smem:[#allocation11 + $0x2]] %s1520_s25  ;;  %s38_s27 = sshll.u32 %s1521_s26, 4  ;;  %s39_s27 = int_to_ptr.vmem [resolvable:$true] %s38_s27 }
  0x17   :  { %48 = sst [smem:[#allocation11 + $0x3]] %s1517_s19  ;;  %s1522_s28 = smov 128  }
  0x18   :  { %50 = sst [smem:[#allocation11 + $0x4]] %s1522_s28  ;;  %s1523_s30 = smov [#allocation5 + $0x2]  }
  0x19   :  { %52 = sst [smem:[#allocation11 + $0x5]] %s1520_s25  ;;  %s1066_s29 = sshll.u32 %s30_s23, 26 }
  0x1a   :  { %54 = sst [smem:[#allocation11 + $0x6]] %s1522_s28  ;;  %s1067_s1 = sadd.s32 134217728, %s1066_s29 }
  0x1b   :  { %56 = sst [smem:[#allocation11 + $0x7]] %s1517_s19  ;;  %s1524_s3 = smov [#allocation10]  }
  0x1c   :  { %58 = sst [smem:[#allocation11 + $0x8]] %s1518_s20 }
  0x1d   :  { %60 = dma.general %s1861_s0, 4096, %s39_s27, %s1523_s30, %s1524_s3, [#allocation11], %s1067_s1, 0  }
  0x1e   :  { %1512 = dma.done.wait [#allocation5 + $0x2], 4096 }
  0x1f   :  { %1513 = vsyncadd [#allocation5 + $0x2], 4294963200  ;;  %v1450_v0 = vld [vmem:[#allocation6 + $0x40] sm:$0xff]   ;;  %v1452_v2 = vld [vmem:[#allocation6 + $0x48] sm:$0xff]   ;;  %s1525_s0 = smov [#allocation9]  }
  0x20   :  { %v1451_v1 = vld [vmem:[#allocation6] sm:$0xff]   ;;  %1087 = vmatprep.subr.bf16.mxu0 %v1450_v0  ;;  %1423 = vmatprep.subr.bf16.mxu1 %v1450_v0  ;;  %v1453_v3 = vld [vmem:[#allocation6 + $0x8] sm:$0xff]   ;;  %v1454_v4 = vld [vmem:[#allocation6 + $0x50] sm:$0xff]   ;;  %s1034_s6 = sshll.u32 %s1525_s0, 4  ;;  %s1035_s6 = int_to_ptr.vmem [resolvable:$true] %s1034_s6 }
  0x21   :  { %1088 = vmatpush3.bf16.msra.mxu0 %v1451_v1  ;;  %1431 = vmatpush3.bf16.msra.mxu1 %v1451_v1  ;;  %v1455_v5 = vld [vmem:[#allocation6 + $0x10] sm:$0xff]   ;;  %v1456_v6 = vld [vmem:[#allocation6 + $0x58] sm:$0xff]   ;;  %v1458_v8 = vld [vmem:[#allocation6 + $0x60] sm:$0xff]   ;;  %s1488_s7 = scalar_lea.vmem %s1035_s6, 4096  ;;  %p1493_p9 = scmp.lt.s32.totalorder %s1035_s6, %s1035_s6 }
  0x22   :  { %1089 = vmatprep.subr.bf16.mxu0 %v1452_v2  ;;  %1424 = vmatprep.subr.bf16.mxu1 %v1452_v2  ;;  %v1457_v7 = vld [vmem:[#allocation6 + $0x18] sm:$0xff]   ;;  %v1459_v9 = vld [vmem:[#allocation6 + $0x20] sm:$0xff]   ;;  %v1460_v10 = vld [vmem:[#allocation6 + $0x68] sm:$0xff]   ;;  %p1489_p8 = scmp.ne.s32.totalorder %s1035_s6, %s1488_s7  ;;  %p1494_p10 = scmp.lt.s32.totalorder %s1488_s7, %s1488_s7 }
  0x23   :  { %v1559_v11 = vld [vmem:[#allocation2 + $0x8] sm:$0xff]  ;;  %v1462_v14 = vld [vmem:[#allocation6 + $0x70] sm:$0xff]   ;;  %v1464_v16 = vld [vmem:[#allocation6 + $0x78] sm:$0xff]  }
  0x24   :  { %v1561_v12 = vld [vmem:[#allocation2 + $0x88] sm:$0xff]  ;;  %258 = vmatprep.mubr.bf16.mxu0 %v1559_v11  ;;  %v1463_v15 = vld [vmem:[#allocation6 + $0x30] sm:$0xff]   ;;  %v1465_v17 = vld [vmem:[#allocation6 + $0x38] sm:$0xff]   ;;  %p1495_p11 = por %p1494_p10, %p1493_p9 }
  0x25   :  { %1090 = vmatpush3.bf16.msra.mxu0 %v1453_v3  ;;  %1432 = vmatpush3.bf16.msra.mxu1 %v1453_v3  ;;  %v1461_v13 = vld [vmem:[#allocation6 + $0x28] sm:$0xff]   ;;  %v1565_v18 = vld [vmem:[#allocation2] sm:$0xff]  ;;  %v1569_v20 = vld [vmem:[#allocation2 + $0x18] sm:$0xff] }
  0x26   :  { %1091 = vmatprep.subr.bf16.mxu0 %v1454_v4  ;;  %1425 = vmatprep.subr.bf16.mxu1 %v1454_v4  ;;  %v1567_v19 = vld [vmem:[#allocation2 + $0x80] sm:$0xff]  ;;  %v1571_v21 = vld [vmem:[#allocation2 + $0x98] sm:$0xff]  ;;  %v1577_v22 = vld [vmem:[#allocation2 + $0x10] sm:$0xff]  ;;  %p1496_p12 = pnand %p1495_p11, %p1489_p8 }
  0x27   :  { %322 = vmatprep.mubr.bf16.mxu1 %v1561_v12  ;;  %v1579_v23 = vld [vmem:[#allocation2 + $0x90] sm:$0xff]  ;;  %v1581_v24 = vld [vmem:[#allocation2 + $0x28] sm:$0xff]  ;;  %v1589_v26 = vld [vmem:[#allocation2 + $0x20] sm:$0xff] }
  0x28   :  { %v1583_v25 = vld [vmem:[#allocation2 + $0xa8] sm:$0xff]  ;;  %v1591_v27 = vld [vmem:[#allocation2 + $0xa0] sm:$0xff]  ;;  %v1593_v28 = vld [vmem:[#allocation2 + $0x38] sm:$0xff] }
  0x29   :  { %1092 = vmatpush3.bf16.msra.mxu0 %v1455_v5  ;;  %1433 = vmatpush3.bf16.msra.mxu1 %v1455_v5  ;;  %v1595_v29 = vld [vmem:[#allocation2 + $0xb8] sm:$0xff]  ;;  %v1601_v30 = vld [vmem:[#allocation2 + $0x30] sm:$0xff]  ;;  %v1605_v32 = vld [vmem:[#allocation2 + $0x48] sm:$0xff] }
  0x2a   :  { %1093 = vmatprep.subr.bf16.mxu0 %v1456_v6  ;;  %1426 = vmatprep.subr.bf16.mxu1 %v1456_v6  ;;  %v1603_v31 = vld [vmem:[#allocation2 + $0xb0] sm:$0xff]  ;;  %v1607_v33 = vld [vmem:[#allocation2 + $0xc8] sm:$0xff]  ;;  %v1613_v34 = vld [vmem:[#allocation2 + $0x40] sm:$0xff] }
  0x2b   :  { %v1615_v35 = vld [vmem:[#allocation2 + $0xc0] sm:$0xff]  ;;  %v1617_v36 = vld [vmem:[#allocation2 + $0x58] sm:$0xff]  ;;  %v1625_v38 = vld [vmem:[#allocation2 + $0x50] sm:$0xff] }
  0x2c   :  { %v1619_v37 = vld [vmem:[#allocation2 + $0xd8] sm:$0xff]  ;;  %v1627_v39 = vld [vmem:[#allocation2 + $0xd0] sm:$0xff]  ;;  %v1629_v40 = vld [vmem:[#allocation2 + $0x68] sm:$0xff] }
  0x2d   :  { %1094 = vmatpush3.bf16.msra.mxu0 %v1457_v7  ;;  %1434 = vmatpush3.bf16.msra.mxu1 %v1457_v7  ;;  %v1631_v41 = vld [vmem:[#allocation2 + $0xe8] sm:$0xff]  ;;  %v1637_v42 = vld [vmem:[#allocation2 + $0x60] sm:$0xff]  ;;  %v1641_v44 = vld [vmem:[#allocation2 + $0x78] sm:$0xff] }
  0x2e   :  { %1095 = vmatprep.subr.bf16.mxu0 %v1458_v8  ;;  %1427 = vmatprep.subr.bf16.mxu1 %v1458_v8  ;;  %v1639_v43 = vld [vmem:[#allocation2 + $0xe0] sm:$0xff]  ;;  %v1643_v45 = vld [vmem:[#allocation2 + $0xf8] sm:$0xff]  ;;  %v1649_v46 = vld [vmem:[#allocation2 + $0x70] sm:$0xff] }
  0x2f   :  { %v1651_v47 = vld [vmem:[#allocation2 + $0xf0] sm:$0xff] }
  0x31   :  { %1096 = vmatpush3.bf16.msra.mxu0 %v1459_v9  ;;  %1435 = vmatpush3.bf16.msra.mxu1 %v1459_v9 }
  0x32   :  { %1097 = vmatprep.subr.bf16.mxu0 %v1460_v10  ;;  %1428 = vmatprep.subr.bf16.mxu1 %v1460_v10 }
  0x35   :  { %1098 = vmatpush3.bf16.msra.mxu0 %v1461_v13  ;;  %1436 = vmatpush3.bf16.msra.mxu1 %v1461_v13 }
  0x36   :  { %1099 = vmatprep.subr.bf16.mxu0 %v1462_v14  ;;  %1429 = vmatprep.subr.bf16.mxu1 %v1462_v14 }
  0x39   :  { %1100 = vmatpush3.bf16.msra.mxu0 %v1463_v15  ;;  %1437 = vmatpush3.bf16.msra.mxu1 %v1463_v15 }
  0x3a   :  { %1101 = vmatprep.subr.bf16.mxu0 %v1464_v16  ;;  %1430 = vmatprep.subr.bf16.mxu1 %v1464_v16 }
  0x3d   :  { %1102 = vmatpush3.bf16.msra.mxu0 %v1465_v17  ;;  %1438 = vmatpush3.bf16.msra.mxu1 %v1465_v17 }
  0x40   :  { %259 = vmatmul.mubr.bf16.vlgmr.msra.gmra.mrb[0].mxu0 %v1565_v18  ;;  %323 = vmatmul.mubr.bf16.vlgmr.msra.gmra.mrb[0].mxu1 %v1567_v19 }
  0x41   :  { %266 = vmatprep.mubr.bf16.mxu0 %v1569_v20  ;;  %330 = vmatprep.mubr.bf16.mxu1 %v1571_v21 }
  0x48   :  { %267 = vmatmul.mubr.bf16.gmra.mrb[4].mxu0 %v1577_v22  ;;  %331 = vmatmul.mubr.bf16.gmra.mrb[4].mxu1 %v1579_v23 }
  0x49   :  { %274 = vmatprep.mubr.bf16.mxu0 %v1581_v24  ;;  %338 = vmatprep.mubr.bf16.mxu1 %v1583_v25 }
  0x50   :  { %275 = vmatmul.mubr.bf16.gmra.mrb[8].mxu0 %v1589_v26  ;;  %339 = vmatmul.mubr.bf16.gmra.mrb[8].mxu1 %v1591_v27 }
  0x51   :  { %282 = vmatprep.mubr.bf16.mxu0 %v1593_v28  ;;  %346 = vmatprep.mubr.bf16.mxu1 %v1595_v29 }
  0x58   :  { %283 = vmatmul.mubr.bf16.gmra.mrb[12].mxu0 %v1601_v30  ;;  %347 = vmatmul.mubr.bf16.gmra.mrb[12].mxu1 %v1603_v31 }
  0x59   :  { %290 = vmatprep.mubr.bf16.mxu0 %v1605_v32  ;;  %354 = vmatprep.mubr.bf16.mxu1 %v1607_v33 }
  0x60   :  { %291 = vmatmul.mubr.bf16.gmra.mrb[16].mxu0 %v1613_v34  ;;  %355 = vmatmul.mubr.bf16.gmra.mrb[16].mxu1 %v1615_v35 }
  0x61   :  { %298 = vmatprep.mubr.bf16.mxu0 %v1617_v36  ;;  %362 = vmatprep.mubr.bf16.mxu1 %v1619_v37 }
  0x68   :  { %299 = vmatmul.mubr.bf16.gmra.mrb[20].mxu0 %v1625_v38  ;;  %363 = vmatmul.mubr.bf16.gmra.mrb[20].mxu1 %v1627_v39 }
  0x69   :  { %306 = vmatprep.mubr.bf16.mxu0 %v1629_v40  ;;  %370 = vmatprep.mubr.bf16.mxu1 %v1631_v41 }
  0x70   :  { %307 = vmatmul.mubr.bf16.gmra.mrb[24].mxu0 %v1637_v42  ;;  %371 = vmatmul.mubr.bf16.gmra.mrb[24].mxu1 %v1639_v43 }
  0x71   :  { %314 = vmatprep.mubr.bf16.mxu0 %v1641_v44  ;;  %378 = vmatprep.mubr.bf16.mxu1 %v1643_v45 }
  0x78   :  { %315 = vmatmul.mubr.bf16.gmra.mrb[28].mxu0 %v1649_v46  ;;  %379 = vmatmul.mubr.bf16.gmra.mrb[28].mxu1 %v1651_v47 }
  0x79   :  { %499 = vmatprep.mubr.bf16.mxu1 %v1559_v11  ;;  %772 = vmatprep.mubr.bf16.mxu0 %v1559_v11 }
 0x113   :  { %v1103_v48 = vpop.f32.mrb[0].mxu0  ;;  %v1151_v49 = vpop.f32.mrb[0].mxu1 }
 0x114   :  { %v1104_v50 = vpop.f32.mrb[1].mxu0  ;;  %v1152_v51 = vpop.f32.mrb[1].mxu1 }
 0x115   :  { %v1105_v52 = vadd.f32 %v1104_v50, %v1103_v48  ;;  %v1153_v53 = vadd.f32 %v1152_v51, %v1151_v49  ;;  %v1106_v54 = vpop.f32.mrb[2].mxu0  ;;  %v1154_v55 = vpop.f32.mrb[2].mxu1 }
 0x116   :  { %v1107_v56 = vpop.f32.mrb[3].mxu0  ;;  %v1155_v57 = vpop.f32.mrb[3].mxu1 }
 0x117   :  { %v1108_v58 = vadd.f32 %v1107_v56, %v1106_v54  ;;  %v1156_v59 = vadd.f32 %v1155_v57, %v1154_v55 }
 0x119   :  { %v387_v60 = vpack.c.bf16 %v1108_v58, %v1105_v52  ;;  %v395_v61 = vpack.c.bf16 %v1156_v59, %v1153_v53 }
 0x11b   :  { %v1109_v62 = vpop.f32.mrb[4].mxu0  ;;  %v1157_v63 = vpop.f32.mrb[4].mxu1  ;;  %1199 = vmatprep.subr.bf16.mxu1 %v395_v61 }
 0x11c   :  { %v1110_v0 = vpop.f32.mrb[5].mxu0  ;;  %v1158_v1 = vpop.f32.mrb[5].mxu1  ;;  %1200 = vmatpush3.bf16.msra.mxu1 %v387_v60 }
 0x11d   :  { %v1111_v2 = vadd.f32 %v1110_v0, %v1109_v62  ;;  %v1159_v3 = vadd.f32 %v1158_v1, %v1157_v63  ;;  %v1112_v4 = vpop.f32.mrb[6].mxu0  ;;  %v1160_v5 = vpop.f32.mrb[6].mxu1 }
 0x11e   :  { %v1113_v6 = vpop.f32.mrb[7].mxu0  ;;  %v1161_v7 = vpop.f32.mrb[7].mxu1 }
 0x11f   :  { %v1114_v8 = vadd.f32 %v1113_v6, %v1112_v4  ;;  %v1162_v9 = vadd.f32 %v1161_v7, %v1160_v5 }
 0x121   :  { %v388_v10 = vpack.c.bf16 %v1114_v8, %v1111_v2  ;;  %v396_v11 = vpack.c.bf16 %v1162_v9, %v1159_v3 }
 0x123   :  { %v1115_v13 = vpop.f32.mrb[8].mxu0  ;;  %v1163_v14 = vpop.f32.mrb[8].mxu1  ;;  %1201 = vmatprep.subr.bf16.mxu1 %v396_v11 }
 0x124   :  { %v1116_v15 = vpop.f32.mrb[9].mxu0  ;;  %v1164_v16 = vpop.f32.mrb[9].mxu1  ;;  %1202 = vmatpush3.bf16.msra.mxu1 %v388_v10 }
 0x125   :  { %v1117_v17 = vadd.f32 %v1116_v15, %v1115_v13  ;;  %v1165_v48 = vadd.f32 %v1164_v16, %v1163_v14  ;;  %v1118_v49 = vpop.f32.mrb[10].mxu0  ;;  %v1166_v50 = vpop.f32.mrb[10].mxu1 }
 0x126   :  { %v1119_v51 = vpop.f32.mrb[11].mxu0  ;;  %v1167_v52 = vpop.f32.mrb[11].mxu1 }
 0x127   :  { %v1120_v53 = vadd.f32 %v1119_v51, %v1118_v49  ;;  %v1168_v54 = vadd.f32 %v1167_v52, %v1166_v50 }
 0x129   :  { %v389_v55 = vpack.c.bf16 %v1120_v53, %v1117_v17  ;;  %v397_v56 = vpack.c.bf16 %v1168_v54, %v1165_v48 }
 0x12b   :  { %v1121_v57 = vpop.f32.mrb[12].mxu0  ;;  %v1169_v58 = vpop.f32.mrb[12].mxu1  ;;  %1203 = vmatprep.subr.bf16.mxu1 %v397_v56 }
 0x12c   :  { %v1122_v59 = vpop.f32.mrb[13].mxu0  ;;  %v1170_v60 = vpop.f32.mrb[13].mxu1  ;;  %1204 = vmatpush3.bf16.msra.mxu1 %v389_v55 }
 0x12d   :  { %v1123_v61 = vadd.f32 %v1122_v59, %v1121_v57  ;;  %v1171_v62 = vadd.f32 %v1170_v60, %v1169_v58  ;;  %v1124_v63 = vpop.f32.mrb[14].mxu0  ;;  %v1172_v0 = vpop.f32.mrb[14].mxu1 }
 0x12e   :  { %v1125_v1 = vpop.f32.mrb[15].mxu0  ;;  %v1173_v2 = vpop.f32.mrb[15].mxu1 }
 0x12f   :  { %v1126_v3 = vadd.f32 %v1125_v1, %v1124_v63  ;;  %v1174_v4 = vadd.f32 %v1173_v2, %v1172_v0 }
 0x131   :  { %v390_v5 = vpack.c.bf16 %v1126_v3, %v1123_v61  ;;  %v398_v6 = vpack.c.bf16 %v1174_v4, %v1171_v62 }
 0x133   :  { %v1127_v7 = vpop.f32.mrb[16].mxu0  ;;  %v1175_v8 = vpop.f32.mrb[16].mxu1  ;;  %1205 = vmatprep.subr.bf16.mxu1 %v398_v6 }
 0x134   :  { %v1128_v9 = vpop.f32.mrb[17].mxu0  ;;  %v1176_v10 = vpop.f32.mrb[17].mxu1  ;;  %1206 = vmatpush3.bf16.msra.mxu1 %v390_v5 }
 0x135   :  { %v1129_v11 = vadd.f32 %v1128_v9, %v1127_v7  ;;  %v1177_v13 = vadd.f32 %v1176_v10, %v1175_v8  ;;  %v1130_v14 = vpop.f32.mrb[18].mxu0  ;;  %v1178_v15 = vpop.f32.mrb[18].mxu1 }
 0x136   :  { %v1131_v16 = vpop.f32.mrb[19].mxu0  ;;  %v1179_v17 = vpop.f32.mrb[19].mxu1 }
 0x137   :  { %v1132_v48 = vadd.f32 %v1131_v16, %v1130_v14  ;;  %v1180_v49 = vadd.f32 %v1179_v17, %v1178_v15 }
 0x139   :  { %v391_v50 = vpack.c.bf16 %v1132_v48, %v1129_v11  ;;  %v399_v51 = vpack.c.bf16 %v1180_v49, %v1177_v13 }
 0x13b   :  { %v1133_v52 = vpop.f32.mrb[20].mxu0  ;;  %v1181_v53 = vpop.f32.mrb[20].mxu1  ;;  %1207 = vmatprep.subr.bf16.mxu1 %v399_v51 }
 0x13c   :  { %v1134_v54 = vpop.f32.mrb[21].mxu0  ;;  %v1182_v55 = vpop.f32.mrb[21].mxu1  ;;  %1208 = vmatpush3.bf16.msra.mxu1 %v391_v50 }
 0x13d   :  { %v1135_v56 = vadd.f32 %v1134_v54, %v1133_v52  ;;  %v1183_v57 = vadd.f32 %v1182_v55, %v1181_v53  ;;  %v1136_v58 = vpop.f32.mrb[22].mxu0  ;;  %v1184_v59 = vpop.f32.mrb[22].mxu1 }
 0x13e   :  { %v1137_v60 = vpop.f32.mrb[23].mxu0  ;;  %v1185_v61 = vpop.f32.mrb[23].mxu1 }
 0x13f   :  { %v1138_v62 = vadd.f32 %v1137_v60, %v1136_v58  ;;  %v1186_v63 = vadd.f32 %v1185_v61, %v1184_v59 }
 0x141   :  { %v392_v0 = vpack.c.bf16 %v1138_v62, %v1135_v56  ;;  %v400_v1 = vpack.c.bf16 %v1186_v63, %v1183_v57 }
 0x143   :  { %v1139_v2 = vpop.f32.mrb[24].mxu0  ;;  %v1187_v3 = vpop.f32.mrb[24].mxu1  ;;  %1209 = vmatprep.subr.bf16.mxu1 %v400_v1 }
 0x144   :  { %v1140_v4 = vpop.f32.mrb[25].mxu0  ;;  %v1188_v5 = vpop.f32.mrb[25].mxu1  ;;  %1210 = vmatpush3.bf16.msra.mxu1 %v392_v0 }
 0x145   :  { %v1141_v6 = vadd.f32 %v1140_v4, %v1139_v2  ;;  %v1189_v7 = vadd.f32 %v1188_v5, %v1187_v3  ;;  %v1142_v8 = vpop.f32.mrb[26].mxu0  ;;  %v1190_v9 = vpop.f32.mrb[26].mxu1 }
 0x146   :  { %v1143_v10 = vpop.f32.mrb[27].mxu0  ;;  %v1191_v11 = vpop.f32.mrb[27].mxu1 }
 0x147   :  { %v1144_v13 = vadd.f32 %v1143_v10, %v1142_v8  ;;  %v1192_v14 = vadd.f32 %v1191_v11, %v1190_v9 }
 0x149   :  { %v393_v15 = vpack.c.bf16 %v1144_v13, %v1141_v6  ;;  %v401_v16 = vpack.c.bf16 %v1192_v14, %v1189_v7 }
 0x14b   :  { %v1145_v17 = vpop.f32.mrb[28].mxu0  ;;  %v1193_v48 = vpop.f32.mrb[28].mxu1  ;;  %1211 = vmatprep.subr.bf16.mxu1 %v401_v16 }
 0x14c   :  { %v1146_v49 = vpop.f32.mrb[29].mxu0  ;;  %v1194_v50 = vpop.f32.mrb[29].mxu1  ;;  %1212 = vmatpush3.bf16.msra.mxu1 %v393_v15 }
 0x14d   :  { %v1147_v51 = vadd.f32 %v1146_v49, %v1145_v17  ;;  %v1195_v52 = vadd.f32 %v1194_v50, %v1193_v48  ;;  %v1148_v53 = vpop.f32.mrb[30].mxu0  ;;  %v1196_v54 = vpop.f32.mrb[30].mxu1 }
 0x14e   :  { %v1149_v55 = vpop.f32.mrb[31].mxu0  ;;  %v1197_v56 = vpop.f32.mrb[31].mxu1 }
 0x14f   :  { %v1150_v57 = vadd.f32 %v1149_v55, %v1148_v53  ;;  %v1198_v58 = vadd.f32 %v1197_v56, %v1196_v54 }
 0x151   :  { %v394_v59 = vpack.c.bf16 %v1150_v57, %v1147_v51  ;;  %v402_v60 = vpack.c.bf16 %v1198_v58, %v1195_v52 }
 0x153   :  { %1213 = vmatprep.subr.bf16.mxu1 %v402_v60 }
 0x154   :  { %1214 = vmatpush3.bf16.msra.mxu1 %v394_v59 }
 0x157   :  { %500 = vmatmul.mubr.bf16.vlgmr.msra.gmra.mrb[32].mxu1 %v1565_v18 }
 0x158   :  { %507 = vmatprep.mubr.bf16.mxu1 %v1569_v20 }
 0x15f   :  { %508 = vmatmul.mubr.bf16.gmra.mrb[36].mxu1 %v1577_v22 }
 0x160   :  { %515 = vmatprep.mubr.bf16.mxu1 %v1581_v24 }
 0x167   :  { %516 = vmatmul.mubr.bf16.gmra.mrb[40].mxu1 %v1589_v26 }
 0x168   :  { %523 = vmatprep.mubr.bf16.mxu1 %v1593_v28 }
 0x16f   :  { %524 = vmatmul.mubr.bf16.gmra.mrb[44].mxu1 %v1601_v30 }
 0x170   :  { %531 = vmatprep.mubr.bf16.mxu1 %v1605_v32 }
 0x177   :  { %532 = vmatmul.mubr.bf16.gmra.mrb[48].mxu1 %v1613_v34 }
 0x178   :  { %539 = vmatprep.mubr.bf16.mxu1 %v1617_v36 }
 0x17f   :  { %540 = vmatmul.mubr.bf16.gmra.mrb[52].mxu1 %v1625_v38 }
 0x180   :  { %547 = vmatprep.mubr.bf16.mxu1 %v1629_v40 }
 0x187   :  { %548 = vmatmul.mubr.bf16.gmra.mrb[56].mxu1 %v1637_v42 }
 0x188   :  { %555 = vmatprep.mubr.bf16.mxu1 %v1641_v44 }
 0x18f   :  { %556 = vmatmul.mubr.bf16.gmra.mrb[60].mxu1 %v1649_v46 }
 0x190   :  { %563 = vmatprep.mubr.bf16.mxu1 %v1561_v12 }
 0x197   :  { %564 = vmatmul.mubr.bf16.gmra.mrb[64].mxu1 %v1567_v19 }
 0x198   :  { %571 = vmatprep.mubr.bf16.mxu1 %v1571_v21 }
 0x19f   :  { %572 = vmatmul.mubr.bf16.gmra.mrb[68].mxu1 %v1579_v23 }
 0x1a0   :  { %579 = vmatprep.mubr.bf16.mxu1 %v1583_v25 }
 0x1a7   :  { %580 = vmatmul.mubr.bf16.gmra.mrb[72].mxu1 %v1591_v27 }
 0x1a8   :  { %587 = vmatprep.mubr.bf16.mxu1 %v1595_v29 }
 0x1af   :  { %588 = vmatmul.mubr.bf16.gmra.mrb[76].mxu1 %v1603_v31 }
 0x1b0   :  { %595 = vmatprep.mubr.bf16.mxu1 %v1607_v33 }
 0x1b7   :  { %596 = vmatmul.mubr.bf16.gmra.mrb[80].mxu1 %v1615_v35 }
 0x1b8   :  { %603 = vmatprep.mubr.bf16.mxu1 %v1619_v37 }
 0x1bf   :  { %604 = vmatmul.mubr.bf16.gmra.mrb[84].mxu1 %v1627_v39 }
 0x1c0   :  { %611 = vmatprep.mubr.bf16.mxu1 %v1631_v41 }
 0x1c7   :  { %612 = vmatmul.mubr.bf16.gmra.mrb[88].mxu1 %v1639_v43 }
 0x1c8   :  { %619 = vmatprep.mubr.bf16.mxu1 %v1643_v45 }
 0x1cf   :  { %620 = vmatmul.mubr.bf16.gmra.mrb[92].mxu1 %v1651_v47 }
 0x22a   :  { %v1215_v61 = vpop.f32.mrb[32].mxu1 }
 0x22b   :  { %v1216_v62 = vpop.f32.mrb[33].mxu1 }
 0x22c   :  { %v1688_v63 = vadd.f32 %v1216_v62, %v1215_v61  ;;  %v1218_v0 = vpop.f32.mrb[34].mxu1 }
 0x22d   :  { %v1219_v1 = vpop.f32.mrb[35].mxu1 }
 0x22e   :  { %v1690_v2 = vadd.f32 %v1219_v1, %v1218_v0 }
 0x232   :  { %v1221_v3 = vpop.f32.mrb[36].mxu1 }
 0x233   :  { %v1222_v4 = vpop.f32.mrb[37].mxu1 }
 0x234   :  { %v1692_v5 = vadd.f32 %v1222_v4, %v1221_v3  ;;  %v1224_v6 = vpop.f32.mrb[38].mxu1 }
 0x235   :  { %v1225_v7 = vpop.f32.mrb[39].mxu1 }
 0x236   :  { %v1694_v8 = vadd.f32 %v1225_v7, %v1224_v6 }
 0x23a   :  { %v1227_v9 = vpop.f32.mrb[40].mxu1 }
 0x23b   :  { %v1228_v10 = vpop.f32.mrb[41].mxu1 }
 0x23c   :  { %v1696_v11 = vadd.f32 %v1228_v10, %v1227_v9  ;;  %v1230_v13 = vpop.f32.mrb[42].mxu1 }
 0x23d   :  { %v1231_v14 = vpop.f32.mrb[43].mxu1 }
 0x23e   :  { %v1698_v15 = vadd.f32 %v1231_v14, %v1230_v13 }
 0x242   :  { %v1233_v16 = vpop.f32.mrb[44].mxu1 }
 0x243   :  { %v1234_v17 = vpop.f32.mrb[45].mxu1 }
 0x244   :  { %v1700_v48 = vadd.f32 %v1234_v17, %v1233_v16  ;;  %v1236_v49 = vpop.f32.mrb[46].mxu1 }
 0x245   :  { %v1237_v50 = vpop.f32.mrb[47].mxu1 }
 0x246   :  { %v1702_v51 = vadd.f32 %v1237_v50, %v1236_v49 }
 0x24a   :  { %v1239_v52 = vpop.f32.mrb[48].mxu1 }
 0x24b   :  { %v1240_v53 = vpop.f32.mrb[49].mxu1 }
 0x24c   :  { %v1704_v54 = vadd.f32 %v1240_v53, %v1239_v52  ;;  %v1242_v55 = vpop.f32.mrb[50].mxu1 }
 0x24d   :  { %v1243_v56 = vpop.f32.mrb[51].mxu1 }
 0x24e   :  { %v1706_v57 = vadd.f32 %v1243_v56, %v1242_v55 }
 0x252   :  { %v1245_v58 = vpop.f32.mrb[52].mxu1 }
 0x253   :  { %v1246_v59 = vpop.f32.mrb[53].mxu1 }
 0x254   :  { %v1708_v60 = vadd.f32 %v1246_v59, %v1245_v58  ;;  %v1248_v61 = vpop.f32.mrb[54].mxu1 }
 0x255   :  { %v1249_v62 = vpop.f32.mrb[55].mxu1 }
 0x256   :  { %v1710_v0 = vadd.f32 %v1249_v62, %v1248_v61  ;;  %v628_v61 = vpack.c.bf16 %v1690_v2, %v1688_v63 }
 0x25a   :  { %v1251_v1 = vpop.f32.mrb[56].mxu1 }
 0x25b   :  { %v1252_v3 = vpop.f32.mrb[57].mxu1 }
 0x25c   :  { %v1712_v4 = vadd.f32 %v1252_v3, %v1251_v1  ;;  %v1254_v6 = vpop.f32.mrb[58].mxu1 }
 0x25d   :  { %v1255_v7 = vpop.f32.mrb[59].mxu1 }
 0x25e   :  { %v1714_v9 = vadd.f32 %v1255_v7, %v1254_v6 }
 0x262   :  { %v1257_v10 = vpop.f32.mrb[60].mxu1 }
 0x263   :  { %v1258_v13 = vpop.f32.mrb[61].mxu1 }
 0x264   :  { %v1716_v14 = vadd.f32 %v1258_v13, %v1257_v10  ;;  %v1260_v16 = vpop.f32.mrb[62].mxu1 }
 0x265   :  { %v1261_v17 = vpop.f32.mrb[63].mxu1 }
 0x266   :  { %v1718_v49 = vadd.f32 %v1261_v17, %v1260_v16  ;;  %v629_v16 = vpack.c.bf16 %v1694_v8, %v1692_v5 }
 0x26a   :  { %v1263_v50 = vpop.f32.mrb[64].mxu1 }
 0x26b   :  { %v1264_v52 = vpop.f32.mrb[65].mxu1 }
 0x26c   :  { %v1720_v53 = vadd.f32 %v1264_v52, %v1263_v50  ;;  %v1266_v55 = vpop.f32.mrb[66].mxu1 }
 0x26d   :  { %v1267_v56 = vpop.f32.mrb[67].mxu1 }
 0x26e   :  { %v1722_v58 = vadd.f32 %v1267_v56, %v1266_v55 }
 0x270   :  { %v636_v59 = vpack.c.bf16 %v1722_v58, %v1720_v53 }
 0x272   :  { %v1269_v62 = vpop.f32.mrb[68].mxu1  ;;  %1311 = vmatprep.subr.bf16.mxu0 %v636_v59 }
 0x273   :  { %v1270_v1 = vpop.f32.mrb[69].mxu1  ;;  %1312 = vmatpush3.bf16.msra.mxu0 %v628_v61 }
 0x274   :  { %v1728_v3 = vadd.f32 %v1270_v1, %v1269_v62  ;;  %v1272_v6 = vpop.f32.mrb[70].mxu1  ;;  %v630_v62 = vpack.c.bf16 %v1698_v15, %v1696_v11 }
 0x275   :  { %v1273_v7 = vpop.f32.mrb[71].mxu1 }
 0x276   :  { %v1730_v10 = vadd.f32 %v1273_v7, %v1272_v6 }
 0x278   :  { %v637_v13 = vpack.c.bf16 %v1730_v10, %v1728_v3 }
 0x27a   :  { %v1275_v17 = vpop.f32.mrb[72].mxu1  ;;  %1313 = vmatprep.subr.bf16.mxu0 %v637_v13 }
 0x27b   :  { %v1276_v50 = vpop.f32.mrb[73].mxu1  ;;  %1314 = vmatpush3.bf16.msra.mxu0 %v629_v16 }
 0x27c   :  { %v1736_v52 = vadd.f32 %v1276_v50, %v1275_v17  ;;  %v1278_v55 = vpop.f32.mrb[74].mxu1 }
 0x27d   :  { %v1279_v56 = vpop.f32.mrb[75].mxu1 }
 0x27e   :  { %1872 = vst [vmem:[#allocation15_spill] sm:$0xff] %v1736_v52  ;;  %v1738_v59 = vadd.f32 %v1279_v56, %v1278_v55  ;;  %v631_v55 = vpack.c.bf16 %v1702_v51, %v1700_v48 }
 0x280   :  { %1873 = vst [vmem:[#allocation16_spill] sm:$0xff] %v1738_v59  ;;  %v638_v61 = vpack.c.bf16 %v1738_v59, %v1736_v52 }
 0x282   :  { %v1281_v1 = vpop.f32.mrb[76].mxu1  ;;  %1315 = vmatprep.subr.bf16.mxu0 %v638_v61 }
 0x283   :  { %v1282_v6 = vpop.f32.mrb[77].mxu1  ;;  %1316 = vmatpush3.bf16.msra.mxu0 %v630_v62 }
 0x284   :  { %v1744_v7 = vadd.f32 %v1282_v6, %v1281_v1  ;;  %v1284_v13 = vpop.f32.mrb[78].mxu1 }
 0x285   :  { %v1285_v16 = vpop.f32.mrb[79].mxu1 }
 0x286   :  { %1874 = vst [vmem:[#allocation17_spill] sm:$0xff] %v1744_v7  ;;  %v1746_v17 = vadd.f32 %v1285_v16, %v1284_v13  ;;  %v632_v13 = vpack.c.bf16 %v1706_v57, %v1704_v54 }
 0x288   :  { %1875 = vst [vmem:[#allocation18_spill] sm:$0xff] %v1746_v17  ;;  %v639_v50 = vpack.c.bf16 %v1746_v17, %v1744_v7 }
 0x28a   :  { %v1287_v56 = vpop.f32.mrb[80].mxu1  ;;  %1317 = vmatprep.subr.bf16.mxu0 %v639_v50 }
 0x28b   :  { %v1288_v59 = vpop.f32.mrb[81].mxu1  ;;  %1318 = vmatpush3.bf16.msra.mxu0 %v631_v55 }
 0x28c   :  { %v1752_v52 = vadd.f32 %v1288_v59, %v1287_v56  ;;  %v1290_v61 = vpop.f32.mrb[82].mxu1 }
 0x28d   :  { %v1291_v62 = vpop.f32.mrb[83].mxu1 }
 0x28e   :  { %1876 = vst [vmem:[#allocation19_spill] sm:$0xff] %v1752_v52  ;;  %v1754_v1 = vadd.f32 %v1291_v62, %v1290_v61  ;;  %v633_v61 = vpack.c.bf16 %v1710_v0, %v1708_v60 }
 0x290   :  { %1877 = vst [vmem:[#allocation20_spill] sm:$0xff] %v1754_v1  ;;  %v640_v6 = vpack.c.bf16 %v1754_v1, %v1752_v52 }
 0x292   :  { %v1293_v16 = vpop.f32.mrb[84].mxu1  ;;  %1319 = vmatprep.subr.bf16.mxu0 %v640_v6 }
 0x293   :  { %v1294_v17 = vpop.f32.mrb[85].mxu1  ;;  %1320 = vmatpush3.bf16.msra.mxu0 %v632_v13 }
 0x294   :  { %v1760_v7 = vadd.f32 %v1294_v17, %v1293_v16  ;;  %v1296_v50 = vpop.f32.mrb[86].mxu1 }
 0x295   :  { %v1297_v55 = vpop.f32.mrb[87].mxu1 }
 0x296   :  { %1878 = vst [vmem:[#allocation21_spill] sm:$0xff] %v1760_v7  ;;  %v1762_v59 = vadd.f32 %v1297_v55, %v1296_v50  ;;  %v634_v50 = vpack.c.bf16 %v1714_v9, %v1712_v4 }
 0x298   :  { %1879 = vst [vmem:[#allocation22_spill] sm:$0xff] %v1762_v59  ;;  %v641_v56 = vpack.c.bf16 %v1762_v59, %v1760_v7 }
 0x29a   :  { %v1299_v62 = vpop.f32.mrb[88].mxu1  ;;  %1321 = vmatprep.subr.bf16.mxu0 %v641_v56 }
 0x29b   :  { %v1300_v1 = vpop.f32.mrb[89].mxu1  ;;  %1322 = vmatpush3.bf16.msra.mxu0 %v633_v61 }
 0x29c   :  { %v1768_v52 = vadd.f32 %v1300_v1, %v1299_v62  ;;  %v1302_v6 = vpop.f32.mrb[90].mxu1 }
 0x29d   :  { %v1303_v13 = vpop.f32.mrb[91].mxu1 }
 0x29e   :  { %v1770_v17 = vadd.f32 %v1303_v13, %v1302_v6  ;;  %v635_v6 = vpack.c.bf16 %v1718_v49, %v1716_v14 }
 0x2a0   :  { %v642_v16 = vpack.c.bf16 %v1770_v17, %v1768_v52 }
 0x2a2   :  { %v1305_v55 = vpop.f32.mrb[92].mxu1  ;;  %1323 = vmatprep.subr.bf16.mxu0 %v642_v16 }
 0x2a3   :  { %v1306_v59 = vpop.f32.mrb[93].mxu1  ;;  %1324 = vmatpush3.bf16.msra.mxu0 %v634_v50 }
 0x2a4   :  { %v1776_v7 = vadd.f32 %v1306_v59, %v1305_v55  ;;  %v1308_v56 = vpop.f32.mrb[94].mxu1 }
 0x2a5   :  { %v1309_v61 = vpop.f32.mrb[95].mxu1 }
 0x2a6   :  { %v1778_v1 = vadd.f32 %v1309_v61, %v1308_v56 }
 0x2a8   :  { %v643_v62 = vpack.c.bf16 %v1778_v1, %v1776_v7 }
 0x2aa   :  { %1325 = vmatprep.subr.bf16.mxu0 %v643_v62 }
 0x2ab   :  { %1326 = vmatpush3.bf16.msra.mxu0 %v635_v6 }
 0x2ae   :  { %773 = vmatmul.mubr.bf16.vlgmr.msra.gmra.mrb[32].mxu0 %v1565_v18 }
 0x2af   :  { %780 = vmatprep.mubr.bf16.mxu0 %v1569_v20 }
 0x2b6   :  { %781 = vmatmul.mubr.bf16.gmra.mrb[36].mxu0 %v1577_v22 }
 0x2b7   :  { %788 = vmatprep.mubr.bf16.mxu0 %v1581_v24 }
 0x2be   :  { %789 = vmatmul.mubr.bf16.gmra.mrb[40].mxu0 %v1589_v26 }
 0x2bf   :  { %796 = vmatprep.mubr.bf16.mxu0 %v1593_v28 }
 0x2c6   :  { %797 = vmatmul.mubr.bf16.gmra.mrb[44].mxu0 %v1601_v30 }
 0x2c7   :  { %804 = vmatprep.mubr.bf16.mxu0 %v1605_v32 }
 0x2ce   :  { %805 = vmatmul.mubr.bf16.gmra.mrb[48].mxu0 %v1613_v34 }
 0x2cf   :  { %812 = vmatprep.mubr.bf16.mxu0 %v1617_v36 }
 0x2d6   :  { %813 = vmatmul.mubr.bf16.gmra.mrb[52].mxu0 %v1625_v38 }
 0x2d7   :  { %820 = vmatprep.mubr.bf16.mxu0 %v1629_v40 }
 0x2de   :  { %821 = vmatmul.mubr.bf16.gmra.mrb[56].mxu0 %v1637_v42 }
 0x2df   :  { %828 = vmatprep.mubr.bf16.mxu0 %v1641_v44 }
 0x2e6   :  { %829 = vmatmul.mubr.bf16.gmra.mrb[60].mxu0 %v1649_v46 }
 0x2e7   :  { %836 = vmatprep.mubr.bf16.mxu0 %v1561_v12 }
 0x2ee   :  { %837 = vmatmul.mubr.bf16.gmra.mrb[64].mxu0 %v1567_v19 }
 0x2ef   :  { %844 = vmatprep.mubr.bf16.mxu0 %v1571_v21 }
 0x2f6   :  { %845 = vmatmul.mubr.bf16.gmra.mrb[68].mxu0 %v1579_v23 }
 0x2f7   :  { %852 = vmatprep.mubr.bf16.mxu0 %v1583_v25 }
 0x2fe   :  { %853 = vmatmul.mubr.bf16.gmra.mrb[72].mxu0 %v1591_v27 }
 0x2ff   :  { %860 = vmatprep.mubr.bf16.mxu0 %v1595_v29 }
 0x306   :  { %861 = vmatmul.mubr.bf16.gmra.mrb[76].mxu0 %v1603_v31 }
 0x307   :  { %868 = vmatprep.mubr.bf16.mxu0 %v1607_v33 }
 0x30e   :  { %869 = vmatmul.mubr.bf16.gmra.mrb[80].mxu0 %v1615_v35 }
 0x30f   :  { %876 = vmatprep.mubr.bf16.mxu0 %v1619_v37 }
 0x316   :  { %877 = vmatmul.mubr.bf16.gmra.mrb[84].mxu0 %v1627_v39 }
 0x317   :  { %884 = vmatprep.mubr.bf16.mxu0 %v1631_v41 }
 0x31e   :  { %885 = vmatmul.mubr.bf16.gmra.mrb[88].mxu0 %v1639_v43 }
 0x31f   :  { %892 = vmatprep.mubr.bf16.mxu0 %v1643_v45 }
 0x326   :  { %893 = vmatmul.mubr.bf16.gmra.mrb[92].mxu0 %v1651_v47 }
 0x381   :  { %v1327_v12 = vpop.f32.mrb[32].mxu0 }
 0x382   :  { %v1328_v18 = vpop.f32.mrb[33].mxu0 }
 0x383   :  { %v1329_v19 = vadd.f32 %v1328_v18, %v1327_v12  ;;  %v1330_v20 = vpop.f32.mrb[34].mxu0 }
 0x384   :  { %v1331_v21 = vpop.f32.mrb[35].mxu0 }
 0x385   :  { %v933_v22 = vadd.f32 %v1329_v19, %v1688_v63  ;;  %v1332_v23 = vadd.f32 %v1331_v21, %v1330_v20 }
 0x387   :  { %v965_v24 = vmul.f32 0.5, %v933_v22  ;;  %v934_v25 = vadd.f32 %v1332_v23, %v1690_v2 }
 0x389   :  { %997 = vst [vmem:[#allocation9] sm:$0xff] %v965_v24  ;;  %v966_v26 = vmul.f32 0.5, %v934_v25  ;;  %v1333_v27 = vpop.f32.mrb[36].mxu0 }
 0x38a   :  { %v1334_v28 = vpop.f32.mrb[37].mxu0 }
 0x38b   :  { %998 = vst [vmem:[#allocation9 + $0x8] sm:$0xff] %v966_v26  ;;  %v1335_v29 = vadd.f32 %v1334_v28, %v1333_v27  ;;  %v1336_v30 = vpop.f32.mrb[38].mxu0 }
 0x38c   :  { %v1337_v31 = vpop.f32.mrb[39].mxu0 }
 0x38d   :  { %v935_v32 = vadd.f32 %v1335_v29, %v1692_v5  ;;  %v1338_v33 = vadd.f32 %v1337_v31, %v1336_v30 }
 0x38f   :  { %v967_v34 = vmul.f32 0.5, %v935_v32  ;;  %v936_v35 = vadd.f32 %v1338_v33, %v1694_v8 }
 0x391   :  { %999 = vst [vmem:[#allocation9 + $0x10] sm:$0xff] %v967_v34  ;;  %v968_v36 = vmul.f32 0.5, %v936_v35  ;;  %v1339_v37 = vpop.f32.mrb[40].mxu0 }
 0x392   :  { %v1340_v38 = vpop.f32.mrb[41].mxu0 }
 0x393   :  { %1000 = vst [vmem:[#allocation9 + $0x18] sm:$0xff] %v968_v36  ;;  %v1341_v39 = vadd.f32 %v1340_v38, %v1339_v37  ;;  %v1342_v40 = vpop.f32.mrb[42].mxu0 }
 0x394   :  { %v1343_v41 = vpop.f32.mrb[43].mxu0 }
 0x395   :  { %v937_v42 = vadd.f32 %v1341_v39, %v1696_v11  ;;  %v1344_v43 = vadd.f32 %v1343_v41, %v1342_v40 }
 0x397   :  { %v969_v44 = vmul.f32 0.5, %v937_v42  ;;  %v938_v45 = vadd.f32 %v1344_v43, %v1698_v15 }
 0x399   :  { %1001 = vst [vmem:[#allocation9 + $0x20] sm:$0xff] %v969_v44  ;;  %v970_v46 = vmul.f32 0.5, %v938_v45  ;;  %v1345_v47 = vpop.f32.mrb[44].mxu0 }
 0x39a   :  { %v1346_v63 = vpop.f32.mrb[45].mxu0 }
 0x39b   :  { %1002 = vst [vmem:[#allocation9 + $0x28] sm:$0xff] %v970_v46  ;;  %v1347_v2 = vadd.f32 %v1346_v63, %v1345_v47  ;;  %v1348_v5 = vpop.f32.mrb[46].mxu0 }
 0x39c   :  { %v1349_v8 = vpop.f32.mrb[47].mxu0 }
 0x39d   :  { %v939_v59 = vadd.f32 %v1347_v2, %v1700_v48  ;;  %v1350_v13 = vadd.f32 %v1349_v8, %v1348_v5 }
 0x39f   :  { %v971_v16 = vmul.f32 0.5, %v939_v59  ;;  %v940_v50 = vadd.f32 %v1350_v13, %v1702_v51 }
 0x3a1   :  { %1003 = vst [vmem:[#allocation9 + $0x30] sm:$0xff] %v971_v16  ;;  %v972_v11 = vmul.f32 0.5, %v940_v50  ;;  %v1351_v55 = vpop.f32.mrb[48].mxu0 }
 0x3a2   :  { %v1352_v56 = vpop.f32.mrb[49].mxu0 }
 0x3a3   :  { %1004 = vst [vmem:[#allocation9 + $0x38] sm:$0xff] %v972_v11  ;;  %v1353_v15 = vadd.f32 %v1352_v56, %v1351_v55  ;;  %v1354_v61 = vpop.f32.mrb[50].mxu0 }
 0x3a4   :  { %v1355_v62 = vpop.f32.mrb[51].mxu0 }
 0x3a5   :  { %v941_v6 = vadd.f32 %v1353_v15, %v1704_v54  ;;  %v1356_v12 = vadd.f32 %v1355_v62, %v1354_v61 }
 0x3a7   :  { %v973_v18 = vmul.f32 0.5, %v941_v6  ;;  %v942_v19 = vadd.f32 %v1356_v12, %v1706_v57 }
 0x3a9   :  { %1005 = vst [vmem:[#allocation9 + $0x40] sm:$0xff] %v973_v18  ;;  %v974_v48 = vmul.f32 0.5, %v942_v19  ;;  %v1357_v20 = vpop.f32.mrb[52].mxu0  ;;  %v1880_v18 = vld [vmem:[#allocation15_spill] sm:$0xff] }
 0x3aa   :  { %v1358_v21 = vpop.f32.mrb[53].mxu0 }
 0x3ab   :  { %1006 = vst [vmem:[#allocation9 + $0x48] sm:$0xff] %v974_v48  ;;  %v1359_v51 = vadd.f32 %v1358_v21, %v1357_v20  ;;  %v1360_v22 = vpop.f32.mrb[54].mxu0  ;;  %v1881_v21 = vld [vmem:[#allocation16_spill] sm:$0xff] }
 0x3ac   :  { %v1361_v23 = vpop.f32.mrb[55].mxu0 }
 0x3ad   :  { %v943_v24 = vadd.f32 %v1359_v51, %v1708_v60  ;;  %v1362_v25 = vadd.f32 %v1361_v23, %v1360_v22 }
 0x3af   :  { %v975_v26 = vmul.f32 0.5, %v943_v24  ;;  %v944_v27 = vadd.f32 %v1362_v25, %v1710_v0 }
 0x3b1   :  { %1007 = vst [vmem:[#allocation9 + $0x50] sm:$0xff] %v975_v26  ;;  %v976_v54 = vmul.f32 0.5, %v944_v27  ;;  %v1363_v28 = vpop.f32.mrb[56].mxu0  ;;  %v1882_v26 = vld [vmem:[#allocation17_spill] sm:$0xff] }
 0x3b2   :  { %v1364_v29 = vpop.f32.mrb[57].mxu0 }
 0x3b3   :  { %1008 = vst [vmem:[#allocation9 + $0x58] sm:$0xff] %v976_v54  ;;  %v1365_v57 = vadd.f32 %v1364_v29, %v1363_v28  ;;  %v1366_v30 = vpop.f32.mrb[58].mxu0  ;;  %v1883_v29 = vld [vmem:[#allocation18_spill] sm:$0xff] }
 0x3b4   :  { %v1367_v31 = vpop.f32.mrb[59].mxu0 }
 0x3b5   :  { %v945_v32 = vadd.f32 %v1365_v57, %v1712_v4  ;;  %v1368_v33 = vadd.f32 %v1367_v31, %v1366_v30 }
 0x3b7   :  { %v977_v34 = vmul.f32 0.5, %v945_v32  ;;  %v946_v35 = vadd.f32 %v1368_v33, %v1714_v9 }
 0x3b9   :  { %1009 = vst [vmem:[#allocation9 + $0x60] sm:$0xff] %v977_v34  ;;  %v978_v60 = vmul.f32 0.5, %v946_v35  ;;  %v1369_v36 = vpop.f32.mrb[60].mxu0 }
 0x3ba   :  { %v1370_v37 = vpop.f32.mrb[61].mxu0 }
 0x3bb   :  { %1010 = vst [vmem:[#allocation9 + $0x68] sm:$0xff] %v978_v60  ;;  %v1371_v0 = vadd.f32 %v1370_v37, %v1369_v36  ;;  %v1372_v38 = vpop.f32.mrb[62].mxu0  ;;  %v1884_v60 = vld [vmem:[#allocation19_spill] sm:$0xff] }
 0x3bc   :  { %v1373_v39 = vpop.f32.mrb[63].mxu0 }
 0x3bd   :  { %v947_v40 = vadd.f32 %v1371_v0, %v1716_v14  ;;  %v1374_v41 = vadd.f32 %v1373_v39, %v1372_v38  ;;  %v1885_v38 = vld [vmem:[#allocation20_spill] sm:$0xff] }
 0x3bf   :  { %v979_v42 = vmul.f32 0.5, %v947_v40  ;;  %v948_v43 = vadd.f32 %v1374_v41, %v1718_v49 }
 0x3c1   :  { %1011 = vst [vmem:[#allocation9 + $0x70] sm:$0xff] %v979_v42  ;;  %v980_v4 = vmul.f32 0.5, %v948_v43  ;;  %v1375_v44 = vpop.f32.mrb[64].mxu0 }
 0x3c2   :  { %v1376_v45 = vpop.f32.mrb[65].mxu0 }
 0x3c3   :  { %1012 = vst [vmem:[#allocation9 + $0x78] sm:$0xff] %v980_v4  ;;  %v1377_v9 = vadd.f32 %v1376_v45, %v1375_v44  ;;  %v1378_v46 = vpop.f32.mrb[66].mxu0  ;;  %v1886_v45 = vld [vmem:[#allocation21_spill] sm:$0xff] }
 0x3c4   :  { %v1379_v47 = vpop.f32.mrb[67].mxu0 }
 0x3c5   :  { %v949_v63 = vadd.f32 %v1377_v9, %v1720_v53  ;;  %v1380_v2 = vadd.f32 %v1379_v47, %v1378_v46 }
 0x3c7   :  { %v981_v5 = vmul.f32 0.5, %v949_v63  ;;  %v950_v8 = vadd.f32 %v1380_v2, %v1722_v58  ;;  %v1887_v63 = vld [vmem:[#allocation22_spill] sm:$0xff] }
 0x3c9   :  { %1013 = vst [vmem:[#allocation9 + $0x80] sm:$0xff] %v981_v5  ;;  %v982_v14 = vmul.f32 0.5, %v950_v8  ;;  %v1381_v59 = vpop.f32.mrb[68].mxu0 }
 0x3ca   :  { %v1382_v13 = vpop.f32.mrb[69].mxu0 }
 0x3cb   :  { %1014 = vst [vmem:[#allocation9 + $0x88] sm:$0xff] %v982_v14  ;;  %v1383_v49 = vadd.f32 %v1382_v13, %v1381_v59  ;;  %v1384_v16 = vpop.f32.mrb[70].mxu0 }
 0x3cc   :  { %v1385_v50 = vpop.f32.mrb[71].mxu0 }
 0x3cd   :  { %v951_v11 = vadd.f32 %v1383_v49, %v1728_v3  ;;  %v1386_v55 = vadd.f32 %v1385_v50, %v1384_v16 }
 0x3cf   :  { %v983_v56 = vmul.f32 0.5, %v951_v11  ;;  %v952_v15 = vadd.f32 %v1386_v55, %v1730_v10 }
 0x3d1   :  { %1015 = vst [vmem:[#allocation9 + $0x90] sm:$0xff] %v983_v56  ;;  %v984_v53 = vmul.f32 0.5, %v952_v15  ;;  %v1387_v61 = vpop.f32.mrb[72].mxu0 }
 0x3d2   :  { %v1388_v62 = vpop.f32.mrb[73].mxu0 }
 0x3d3   :  { %1016 = vst [vmem:[#allocation9 + $0x98] sm:$0xff] %v984_v53  ;;  %v1389_v58 = vadd.f32 %v1388_v62, %v1387_v61  ;;  %v1390_v6 = vpop.f32.mrb[74].mxu0 }
 0x3d4   :  { %v1391_v12 = vpop.f32.mrb[75].mxu0 }
 0x3d5   :  { %v953_v19 = vadd.f32 %v1389_v58, %v1880_v18  ;;  %v1392_v48 = vadd.f32 %v1391_v12, %v1390_v6 }
 0x3d7   :  { %v985_v20 = vmul.f32 0.5, %v953_v19  ;;  %v954_v51 = vadd.f32 %v1392_v48, %v1881_v21 }
 0x3d9   :  { %1017 = vst [vmem:[#allocation9 + $0xa0] sm:$0xff] %v985_v20  ;;  %v986_v3 = vmul.f32 0.5, %v954_v51  ;;  %v1393_v22 = vpop.f32.mrb[76].mxu0 }
 0x3da   :  { %v1394_v23 = vpop.f32.mrb[77].mxu0 }
 0x3db   :  { %1018 = vst [vmem:[#allocation9 + $0xa8] sm:$0xff] %v986_v3  ;;  %v1395_v10 = vadd.f32 %v1394_v23, %v1393_v22  ;;  %v1396_v24 = vpop.f32.mrb[78].mxu0 }
 0x3dc   :  { %v1397_v25 = vpop.f32.mrb[79].mxu0 }
 0x3dd   :  { %v955_v27 = vadd.f32 %v1395_v10, %v1882_v26  ;;  %v1398_v54 = vadd.f32 %v1397_v25, %v1396_v24 }
 0x3df   :  { %v987_v28 = vmul.f32 0.5, %v955_v27  ;;  %v956_v57 = vadd.f32 %v1398_v54, %v1883_v29 }
 0x3e1   :  { %1019 = vst [vmem:[#allocation9 + $0xb0] sm:$0xff] %v987_v28  ;;  %v988_v30 = vmul.f32 0.5, %v956_v57  ;;  %v1399_v31 = vpop.f32.mrb[80].mxu0 }
 0x3e2   :  { %v1400_v32 = vpop.f32.mrb[81].mxu0 }
 0x3e3   :  { %1020 = vst [vmem:[#allocation9 + $0xb8] sm:$0xff] %v988_v30  ;;  %v1401_v33 = vadd.f32 %v1400_v32, %v1399_v31  ;;  %v1402_v34 = vpop.f32.mrb[82].mxu0 }
 0x3e4   :  { %v1403_v35 = vpop.f32.mrb[83].mxu0 }
 0x3e5   :  { %v957_v36 = vadd.f32 %v1401_v33, %v1884_v60  ;;  %v1404_v37 = vadd.f32 %v1403_v35, %v1402_v34 }
 0x3e7   :  { %v989_v0 = vmul.f32 0.5, %v957_v36  ;;  %v958_v39 = vadd.f32 %v1404_v37, %v1885_v38 }
 0x3e9   :  { %1021 = vst [vmem:[#allocation9 + $0xc0] sm:$0xff] %v989_v0  ;;  %v990_v40 = vmul.f32 0.5, %v958_v39  ;;  %v1405_v41 = vpop.f32.mrb[84].mxu0 }
 0x3ea   :  { %v1406_v42 = vpop.f32.mrb[85].mxu0 }
 0x3eb   :  { %1022 = vst [vmem:[#allocation9 + $0xc8] sm:$0xff] %v990_v40  ;;  %v1407_v43 = vadd.f32 %v1406_v42, %v1405_v41  ;;  %v1408_v4 = vpop.f32.mrb[86].mxu0 }
 0x3ec   :  { %v1409_v44 = vpop.f32.mrb[87].mxu0 }
 0x3ed   :  { %v959_v9 = vadd.f32 %v1407_v43, %v1886_v45  ;;  %v1410_v46 = vadd.f32 %v1409_v44, %v1408_v4 }
 0x3ef   :  { %v991_v47 = vmul.f32 0.5, %v959_v9  ;;  %v960_v2 = vadd.f32 %v1410_v46, %v1887_v63 }
 0x3f1   :  { %1023 = vst [vmem:[#allocation9 + $0xd0] sm:$0xff] %v991_v47  ;;  %v992_v5 = vmul.f32 0.5, %v960_v2  ;;  %v1411_v8 = vpop.f32.mrb[88].mxu0 }
 0x3f2   :  { %v1412_v14 = vpop.f32.mrb[89].mxu0 }
 0x3f3   :  { %1024 = vst [vmem:[#allocation9 + $0xd8] sm:$0xff] %v992_v5  ;;  %v1413_v59 = vadd.f32 %v1412_v14, %v1411_v8  ;;  %v1414_v13 = vpop.f32.mrb[90].mxu0 }
 0x3f4   :  { %v1415_v49 = vpop.f32.mrb[91].mxu0 }
 0x3f5   :  { %v961_v16 = vadd.f32 %v1413_v59, %v1768_v52  ;;  %v1416_v50 = vadd.f32 %v1415_v49, %v1414_v13 }
 0x3f7   :  { %v993_v11 = vmul.f32 0.5, %v961_v16  ;;  %v962_v55 = vadd.f32 %v1416_v50, %v1770_v17 }
 0x3f9   :  { %1025 = vst [vmem:[#allocation9 + $0xe0] sm:$0xff] %v993_v11  ;;  %v994_v56 = vmul.f32 0.5, %v962_v55  ;;  %v1417_v15 = vpop.f32.mrb[92].mxu0 }
 0x3fa   :  { %v1418_v53 = vpop.f32.mrb[93].mxu0 }
 0x3fb   :  { %1026 = vst [vmem:[#allocation9 + $0xe8] sm:$0xff] %v994_v56  ;;  %v1419_v61 = vadd.f32 %v1418_v53, %v1417_v15  ;;  %v1420_v62 = vpop.f32.mrb[94].mxu0 }
 0x3fc   :  { %v1421_v58 = vpop.f32.mrb[95].mxu0 }
 0x3fd   :  { %v963_v6 = vadd.f32 %v1419_v61, %v1776_v7  ;;  %v1422_v12 = vadd.f32 %v1421_v58, %v1420_v62 }
 0x3ff   :  { %v995_v18 = vmul.f32 0.5, %v963_v6  ;;  %v964_v52 = vadd.f32 %v1422_v12, %v1778_v1 }
 0x401   :  { %1027 = vst [vmem:[#allocation9 + $0xf0] sm:$0xff] %v995_v18  ;;  %v996_v19 = vmul.f32 0.5, %v964_v52 }
 0x403   :  { %1028 = vst [vmem:[#allocation9 + $0xf8] sm:$0xff] %v996_v19 }
 0x404   :  { %1499 = shalt.err (!%p1496_p12)
}
 0x405   :  { %s1500_s10 = scalar_lea.hbm %s1863_s2, 4096 }
 0x406   :  { %p1501_p13 = scmp.ne.s32.totalorder %s1863_s2, %s1500_s10  ;;  %p1504_p0 = scmp.lt.u32.totalorder %s1500_s10, %s1863_s2 }
 0x408   :  { %p1506_p1 = pnand %p1504_p0, %p1501_p13 }
 0x40a   :  { %1509 = shalt.err (!%p1506_p1)
}
 0x40b   :  { %s1526_s15 = smov 8  }
 0x40c   :  { %1040 = dma.vmem_to_hbm [thread:$0]  %s1035_s6, 4096, %s1863_s2, [#allocation8], %s1522_s28, %s1522_s28, %s1526_s15  }
 0x40d   :  { %1514 = dma.done.wait [#allocation8], 4096  }
 0x40e   :  { %1515 = vsyncadd [#allocation8], 4294963200 }
 0x40f   :  { %1044 = vsyncpa [#allocation7], 1 }
 0x410   :  { %1045 = vsyncpa [#allocation8], 1 }
 0x411   :  { %1046 = vsyncmov [#allocation5] }
 0x414   :  { %s1047_s18 = vpop.sfrf %1046 }
 0x415   :  { %p1084_p2 = scmp.ne.s32.totalorder %s1047_s18, 0 }
 0x417   :  { %1051 = shalt.err (%p1084_p2)  }
 0x418   :  { %1053 = vsyncmov [#allocation5 + $0x1] }
 0x41b   :  { %s1054_s19 = vpop.sfrf %1053 }
 0x41c   :  { %p1085_p3 = scmp.ne.s32.totalorder %s1054_s19, 0 }
 0x41e   :  { %1058 = shalt.err (%p1085_p3)  }
 0x41f   :  { %1060 = vsyncmov [#allocation5 + $0x2] }
 0x422   :  { %s1061_s20 = vpop.sfrf %1060 }
 0x423   :  { %p1086_p4 = scmp.ne.s32.totalorder %s1061_s20, 0 }
 0x425   :  { %1065 = shalt.err (%p1086_p4)  }

</bundles_post_ra>
